<compile_context>
chip_gen: v7x
topology: tpu7x:2x2x1
jax: 0.10.0
libtpu: 0.0.40
codegen_flags: <defaults>
</compile_context>

<pallas_src>
import math

import numpy as np

import jax
import jax.numpy as jnp
from jax.experimental import pallas as pl
from jax.experimental.pallas import tpu as pltpu


def make_positional_encoding_table(d_model: int, max_len: int = 5000) -> jnp.ndarray:
    """pe[pos, 0, d] exactly as registered in the PyTorch module: (max_len, 1, d_model)."""
    position = jnp.arange(max_len, dtype=jnp.float32)[:, None]
    div_term = jnp.exp(
        jnp.arange(0, d_model, 2, dtype=jnp.float32) * (-math.log(10000.0) / d_model)
    )
    pe = jnp.zeros((max_len, 1, d_model), dtype=jnp.float32)
    pe = pe.at[:, 0, 0::2].set(jnp.sin(position * div_term))
    pe = pe.at[:, 0, 1::2].set(jnp.cos(position * div_term))
    return pe


# ---------------------------------------------------------------------------
# Kernels (operate on 2D lane-dense slabs: x (TS, B*D), pe (TS, D))
# ---------------------------------------------------------------------------

def _broadcast_pe(pe_row, batch):
    # Lane-broadcast the (TS, D) PE row over batch -> (TS, B*D).  Free-ish
    # (XLU/VPU slack) in this HBM-bound regime; avoids reading PE per batch.
    if batch == 1:
        return pe_row
    return jnp.concatenate([pe_row] * batch, axis=-1)


def _make_add_pe_kernel(batch: int):
    def kernel(x_ref, pe_ref, o_ref):
        pe_b = _broadcast_pe(pe_ref[...], batch)                     # f32
        o_ref[...] = (x_ref[...].astype(jnp.float32) + pe_b).astype(o_ref.dtype)
    return kernel


def _make_dropout_bits_kernel(keep_prob: float, batch: int):
    inv_keep = np.float32(1.0 / keep_prob)
    # Keep an element iff its uniform u8 draw < keep_prob * 256 (integer compare,
    # 1/256 probability resolution is fine for dropout).
    threshold = np.uint8(min(int(round(keep_prob * 256.0)), 255))

    def kernel(x_ref, pe_ref, bits_ref, o_ref):
        pe_b = _broadcast_pe(pe_ref[...], batch)
        val = x_ref[...].astype(jnp.float32) + pe_b
        keep = bits_ref[...] < threshold
        o_ref[...] = jnp.where(keep, val * inv_keep, 0.0).astype(o_ref.dtype)
    return kernel


def _make_dropout_prng_kernel(keep_prob: float, batch: int):
    inv_keep = np.float32(1.0 / keep_prob)
    threshold = np.uint32(min(int(round(keep_prob * 4294967296.0)), 4294967295))

    def kernel(seed_ref, x_ref, pe_ref, o_ref):
        # Per-block seed so every grid step draws an independent stream.
        pltpu.prng_seed(seed_ref[0] + pl.program_id(0))
        bits = pltpu.bitcast(pltpu.prng_random_bits(x_ref.shape), jnp.uint32)
        pe_b = _broadcast_pe(pe_ref[...], batch)
        val = x_ref[...].astype(jnp.float32) + pe_b
        keep = bits < threshold
        o_ref[...] = jnp.where(keep, val * inv_keep, 0.0).astype(o_ref.dtype)
    return kernel


# ---------------------------------------------------------------------------
# Tile sizing (VMEM-padding aware, generation aware)
# ---------------------------------------------------------------------------

def _round_up(v: int, m: int) -> int:
    return ((v + m - 1) // m) * m


def _vmem_params():
    """(tile budget bytes, compiler vmem limit bytes), from this gen's VMEM."""
    cap = 64 * 1024 * 1024          # v7x-sized fallback (smallest of v5e/v6e/v7x)
    try:
        cap = int(pltpu.get_tpu_info().vmem_capacity_bytes)
    except Exception:
        pass
    return int(cap * 0.40), int(cap * 0.65)


def _choose_block_rows(s, lanes_x, lanes_pe, x_itemsize, bits_itemsize,
                       vmem_budget_bytes):
    """Largest seq tile whose *padded*, double-buffered footprint fits the
    budget, capped so the 1-D grid still has >= 2 blocks (v7x megacore)."""
    pad_x = _round_up(lanes_x, 128)            # lane padding of the (TS, B*D) slab
    pad_pe = _round_up(lanes_pe, 128)          # lane padding of the (TS, D) PE slab
    per_row = pad_x * x_itemsize * 2 * 2       # x in + out, each double-buffered
    per_row += pad_pe * 4 * 2                  # f32 PE row, double-buffered
    if bits_itemsize:
        per_row += pad_x * bits_itemsize * 2   # dropout bits, double-buffered
    ts = max(8, vmem_budget_bytes // per_row)
    ts = min(ts, 1024, s)                      # >~512-row tiles are already ~roofline
    if s >= 16:
        ts = min(ts, _round_up(-(-s // 2), 8))  # >= 2 blocks -> both TCs busy on v7x
    if ts < s:
        ts = max(8, (ts // 32) * 32 if ts >= 32 else (ts // 8) * 8)
    return max(1, min(ts, s))


# ---------------------------------------------------------------------------
# Wrapper
# ---------------------------------------------------------------------------

def positional_encoding_forward(
    x: jnp.ndarray,
    pe: jnp.ndarray,
    *,
    dropout_p: float = 0.1,
    deterministic: bool = True,
    rng_key=None,
    block_rows: int | None = None,
    use_in_kernel_prng: bool = False,
) -> jnp.ndarray:
    """
    x:  [seq_len, batch, d_model]
    pe: [max_len, 1, d_model]  (the PyTorch buffer, float32)
    deterministic=True  -> eval mode (dropout identity), matches torch .eval()
    deterministic=False -> training mode, inverted dropout (rng_key required)
    """
    s, b, d = x.shape
    assert pe.shape[0] >= s and pe.shape[1] == 1 and pe.shape[2] == d

    apply_dropout = (not deterministic) and dropout_p > 0.0
    keep_prob = 1.0 - dropout_p

    # Lane-dense 2D views (trailing-dim collapses are free in XLA).
    # PE stays float32 (as in the torch buffer); the add is done in f32.
    x2 = x.reshape(s, b * d)
    pe2 = pe[:s].reshape(s, d).astype(jnp.float32)

    vmem_budget, vmem_limit = _vmem_params()
    bits_itemsize = 1 if (apply_dropout and not use_in_kernel_prng) else 0

    if block_rows is not None:
        ts = min(block_rows, s)
        if ts < s:
            ts = max(8, (ts // 8) * 8)
    else:
        ts = _choose_block_rows(s, b * d, d, x.dtype.itemsize, bits_itemsize,
                                vmem_budget)
    if bits_itemsize and ts < s and ts % 32 != 0:
        # uint8 dropout bits pack 32 rows per sublane tile; keep the block's
        # sublane dim native-tile aligned (or span the full seq dim).
        ts = s if s <= 32 else max(32, (ts // 32) * 32)
    ts = max(1, min(ts, s))
    num_blocks = pl.cdiv(s, ts)

    x_spec = pl.BlockSpec((ts, b * d), lambda i, *_: (i, 0))
    pe_spec = pl.BlockSpec((ts, d), lambda i, *_: (i, 0))
    bits_spec = pl.BlockSpec((ts, b * d), lambda i, *_: (i, 0))
    out_spec = pl.BlockSpec((ts, b * d), lambda i, *_: (i, 0))

    compiler_params = pltpu.CompilerParams(
        # Every grid step writes a disjoint output block -> shardable across
        # both TensorCores on v7x; harmless on v5e/v6e.
        dimension_semantics=("parallel",),
        vmem_limit_bytes=vmem_limit,
    )
    out_shape = jax.ShapeDtypeStruct((s, b * d), x.dtype)

    if apply_dropout and use_in_kernel_prng:
        if rng_key is None:
            raise ValueError("training mode requires rng_key")
        seed = jax.random.randint(rng_key, (1,), 0, np.iinfo(np.int32).max,
                                  dtype=jnp.int32)
        grid_spec = pltpu.PrefetchScalarGridSpec(
            num_scalar_prefetch=1, grid=(num_blocks,),
            in_specs=[x_spec, pe_spec], out_specs=out_spec)
        out2 = pl.pallas_call(
            _make_dropout_prng_kernel(keep_prob, b),
            out_shape=out_shape, grid_spec=grid_spec,
            compiler_params=compiler_params,
        )(seed, x2, pe2)
    elif apply_dropout:
        if rng_key is None:
            raise ValueError("training mode requires rng_key")
        # uint8 bits: 4x less HBM traffic than uint32 for the host-RNG path.
        bits = jax.random.bits(rng_key, (s, b * d), dtype=jnp.uint8)
        grid_spec = pltpu.PrefetchScalarGridSpec(
            num_scalar_prefetch=0, grid=(num_blocks,),
            in_specs=[x_spec, pe_spec, bits_spec], out_specs=out_spec)
        out2 = pl.pallas_call(
            _make_dropout_bits_kernel(keep_prob, b),
            out_shape=out_shape, grid_spec=grid_spec,
            compiler_params=compiler_params,
            input_output_aliases={0: 0},
        )(x2, pe2, bits)
    else:
        grid_spec = pltpu.PrefetchScalarGridSpec(
            num_scalar_prefetch=0, grid=(num_blocks,),
            in_specs=[x_spec, pe_spec], out_specs=out_spec)
        out2 = pl.pallas_call(
            _make_add_pe_kernel(b),
            out_shape=out_shape, grid_spec=grid_spec,
            compiler_params=compiler_params,
            input_output_aliases={0: 0},
        )(x2, pe2)

    return out2.reshape(s, b, d)


if __name__ == "__main__":
    d_model = 32
    max_len = 5000
    seq_len = 16
    batch = 2

    key = jax.random.PRNGKey(0)
    x = jax.random.normal(key, (seq_len, batch, d_model), dtype=jnp.float32)
    pe = make_positional_encoding_table(d_model, max_len)

    # Reference computed up-front (x buffer may be aliased/overwritten by the kernel).
    ref = x + pe[:seq_len]
    ref = jax.block_until_ready(ref)

    # Eval mode (dropout == identity). block_rows=8 forces a multi-step grid to
    # exercise the tiled index maps even at this tiny size.
    out_eval = positional_encoding_forward(
        x, pe, dropout_p=0.1, deterministic=True, block_rows=8)
    out_eval = jax.block_until_ready(out_eval)
    assert out_eval.shape == (seq_len, batch, d_model)
    assert jnp.allclose(out_eval, ref, atol=1e-6, rtol=1e-6), "eval-mode mismatch"

    # Training mode (inverted dropout; host-side uint8-bits path).
    keep_prob = 0.9
    out_train = positional_encoding_forward(
        x, pe, dropout_p=1.0 - keep_prob, deterministic=False,
        rng_key=jax.random.PRNGKey(42))
    out_train = jax.block_until_ready(out_train)
    assert out_train.shape == (seq_len, batch, d_model)
    dropped = out_train == 0
    ok = dropped | jnp.isclose(out_train * keep_prob, ref, atol=1e-5, rtol=1e-5)
    assert bool(jnp.all(ok)), "training-mode values must be 0 or (x + pe) / keep_prob"

    print("KERNEL_OK")
</pallas_src>

<mosaic_0001>
module attributes {stable_mosaic.version = 11 : i64} {
  func.func @kernel(%arg0: i32, %arg1: memref<8x64xf32, #tpu.memory_space<vmem>>, %arg2: memref<8x32xf32, #tpu.memory_space<vmem>>, %arg3: memref<8x64xf32, #tpu.memory_space<vmem>>) attributes {dimension_semantics = [#tpu.dimension_semantics<parallel>], iteration_bounds = array<i64: 2>, scalar_prefetch = 0 : i64, scratch_operands = 0 : i64, tpu.core_type = #tpu.core_type<tc>, window_params = [{transform_indices = @transform_0, window_bounds = array<i64: 8, 64>}, {transform_indices = @transform_1, window_bounds = array<i64: 8, 32>}, {transform_indices = @transform_2, window_bounds = array<i64: 8, 64>}]} {
    %c0 = arith.constant 0 : index
    %c0_0 = arith.constant 0 : index
    %0 = vector.load %arg2[%c0, %c0_0] : memref<8x32xf32, #tpu.memory_space<vmem>>, vector<8x32xf32>
    %1 = tpu.concatenate %0, %0 in 1 : vector<8x32xf32>, vector<8x32xf32> -> vector<8x64xf32>
    %c0_1 = arith.constant 0 : index
    %c0_2 = arith.constant 0 : index
    %2 = vector.load %arg1[%c0_1, %c0_2] : memref<8x64xf32, #tpu.memory_space<vmem>>, vector<8x64xf32>
    %3 = arith.addf %2, %1 : vector<8x64xf32>
    %c0_3 = arith.constant 0 : index
    %c0_4 = arith.constant 0 : index
    %4 = vector.load %arg3[%c0_3, %c0_4] : memref<8x64xf32, #tpu.memory_space<vmem>>, vector<8x64xf32>
    tpu.vector_store %arg3[%c0_3, %c0_4], %3 {strides = array<i32>} : memref<8x64xf32, #tpu.memory_space<vmem>>, vector<8x64xf32>,
    return
  }
  func.func @transform_0(%arg0: i32) -> (i32, i32) {
    %c0_i32 = arith.constant 0 : i32
    %c0_i32_0 = arith.constant 0 : i32
    return %arg0, %c0_i32 : i32, i32
  }
  func.func @transform_1(%arg0: i32) -> (i32, i32) {
    %c0_i32 = arith.constant 0 : i32
    %c0_i32_0 = arith.constant 0 : i32
    return %arg0, %c0_i32 : i32, i32
  }
  func.func @transform_2(%arg0: i32) -> (i32, i32) {
    %c0_i32 = arith.constant 0 : i32
    %c0_i32_0 = arith.constant 0 : i32
    return %arg0, %c0_i32 : i32, i32
  }
}

</mosaic_0001>

<bundles_post_ra>
// kernel: tpu_custom_call.1
= control target key start
LH: loop header
LB: loop body
LE: loop exit
PB: predicated region body
PF: predicated region fallthrough
CT: control target
= control target key end

     0   :  { %7 = vsyncpa [#allocation3], 0  ;;  %s625_s0 = inlined_call_operand.hbm [shape: f32[16,64], index: 0, kind: input, shape index: {}, may-alias: {0,2}]   ;;  %s626_s1 = inlined_call_operand.vmem [shape: f32[16,32], index: 1, kind: input, shape index: {}]   ;;  %s627_s2 = inlined_call_operand.hbm [shape: f32[16,64], index: 2, kind: output, shape index: {}, may-alias: {0,2}]  }
   0x1   :  { %9 = vsyncpa [#allocation3 + $0x1], 0 }
   0x2   :  { %10 = vsyncpa [#allocation4], 0 }
   0x3   :  { %12 = vsyncpa [#allocation4 + $0x1], 0  ;;  %s459_s9 = smov 0   ;;  %s461_s10 = smov 0  }
   0x4   :  { %s463_s11 = smov 0   ;;  %s465_s12 = smov 0  }
   0x5 LB: > { %s480_s13 = sadd.s32 4294967295, %s439_s12   ;;  %s283_s14 = sadd.s32 4294967294, %s439_s12   ;;  %s439_s12 = sphi %s465_s12, %s642_s12   ;;  %s435_s11 = sphi %s463_s11, %s641_s11   ;;  %s431_s10 = sphi %s461_s10, %s640_s10   ;;  %s427_s9 = sphi %s459_s9, %s639_s9  }
   0x6   : > { %s484_s15 = sadd.s32 1, %s439_s12   ;;  %s25_s16 = sadd.s32 1, %s435_s11 }
   0x7   : > { %s22_s17 = ssub.s32 %s439_s12, %s484_s15  ;;  %p32_p0 = scmp.ne.s32.totalorder %s435_s11, %s431_s10 }
   0x8   : > { %p23_p1 = scmp.eq.s32.totalorder %s22_s17, 0  ;;  %p33_p2 = scmp.eq.s32.totalorder %s439_s12, 0 }
   0x9   : > { %p38_p3 = scmp.ne.s32.totalorder %s431_s10, %s427_s9  ;;  %p39_p4 = scmp.eq.s32.totalorder %s480_s13, 0 }
   0xa   : > { %s496_s18 = scalar_select %p23_p1, %s435_s11, %s25_s16  }
   0xb   : > { %p498_p5 = por %p33_p2, %p32_p0  ;;  %p502_p6 = por %p39_p4, %p38_p3 }
   0xc   : > { %p88_p7 = scmp.eq.s32.totalorder %s480_s13, 1  ;;  %p94_p8 = scmp.eq.s32.totalorder %s283_s14, 1 }
   0xd   : > { %p308_p10 = scmp.lt.s32.totalorder %s439_s12, 2  ;;  %s114_s23 = sand.u32 1, %s435_s11  }
   0xe   : > { %p509_p11 = por %p88_p7, %p32_p0  ;;  %p513_p12 = por %p94_p8, %p38_p3 }
   0xf   : > { %s287_s24 = sshll.u32 %s439_s12, 7  ;;  %s286_s25 = sshll.u32 %s114_s23, 3 }
  0x10   : > { %s631_s21 = scalar_select %p509_p11, 1, 0 }
  0x11   : > { %s632_s22 = scalar_select %p513_p12, 1, 0 }
  0x12   : > { %s522_s28 = scalar_lea.hbm %s625_s0, %s287_s24  ;;  %s118_s29 = scalar_lea.vmem [#allocation2], %s286_s25 }
  0x13   : > { %s125_s30 = sshll.u32 %s118_s29, 4  ;;  %p526_p13 = pnand %p308_p10, %p498_p5  ;;  %s530_s30 = int_to_ptr.vmem [resolvable:$true] %s125_s30 }
  0x14   : > { %s115_s4 = scalar_lea.sflag [#allocation3], %s114_s23  ;;  %s343_s5 = scalar_lea.hbm %s522_s28, 128 }
  0x15   : > { %p344_p2 = scmp.ne.s32.totalorder %s522_s28, %s343_s5  ;;  %p345_p3 = pneg %p526_p13 }
  0x16   : > { %s348_s8 = scalar_lea.hbm %s625_s0, 256  ;;  %p349_p5 = scmp.lt.u32.totalorder %s522_s28, %s625_s0 }
  0x17   : > { %p346_p4 = pnand %p345_p3, %p344_p2  ;;  %p350_p8 = scmp.lt.u32.totalorder %s348_s8, %s343_s5 }
  0x18   : > { %p352_p9 = scmp.lt.u32.totalorder %s343_s5, %s522_s28 }
  0x19   : > { %p347_p7 = pneg %p346_p4  ;;  %p351_p10 = por %p350_p8, %p349_p5 }
  0x1b   : > { %p353_p0 = por %p352_p9, %p351_p10 }
  0x1d   : > { %p354_p1 = pnand %p353_p0, %p347_p7 }
  0x1f   : > { %357 = shalt.err (!%p354_p1)
}
  0x20   : > { %s358_s17 = scalar_lea.vmem %s530_s30, 128  ;;  %s441_s19 = smov [#allocation2]  }
  0x21   : > { %p359_p2 = scmp.ne.s32.totalorder %s530_s30, %s358_s17  ;;  %s363_s23 = sshll.u32 %s441_s19, 4  ;;  %s364_s23 = int_to_ptr.vmem [resolvable:$false] %s363_s23 }
  0x22   : > { %s365_s24 = scalar_lea.vmem %s364_s23, 256  ;;  %p366_p11 = scmp.lt.s32.totalorder %s530_s30, %s364_s23 }
  0x23   : > { %p361_p4 = pnand %p359_p2, %p345_p3  ;;  %p367_p5 = scmp.lt.s32.totalorder %s365_s24, %s358_s17 }
  0x25   : > { %p362_p12 = pneg %p361_p4  ;;  %p368_p8 = por %p367_p5, %p366_p11 }
  0x27   : > { %p369_p9 = pnand %p368_p8, %p362_p12 }
  0x29   : > { %372 = shalt.err (!%p369_p9)
}
  0x2a   : > { %303 = dma.hbm_to_vmem [thread:$0]  (!%p526_p13), %s522_s28, 128, %s530_s30, %s115_s4  }
  0x2b   : > { %p634_p0 = scmp.lt.s32.totalorder %s439_s12, 3  ;;  %p635_p1 = scmp.ge.s32.totalorder %s439_s12, 1 }
  0x2d   : > { %p138_p3 = pnand %p635_p1, %p634_p0 }
  0x2e   : > { %s564_s25 = sand.u32 (!%p138_p3), 1, %s431_s10  }
  0x2f   : > { %141 = sbr.rel (%p138_p3) target bundleno = 194 (0xc2), region = 28  ;;  %s289_s26 = sshll.u32 (!%p138_p3), %s564_s25, 3 }
  0x30   : > { %s144_s27 = scalar_lea.sflag (!%p138_p3), [#allocation3], %s564_s25  ;;  %s147_s29 = scalar_lea.vmem (!%p138_p3), [#allocation2], %s289_s26 }
  0x36   : > { %418 = dma.done.wait (%p502_p6), %s144_s27, 128  }
  0x37   : > { %420 = vsyncadd (%p502_p6), %s144_s27, 4294967168  ;;  %p172_p11 = scmp.lt.s32.totalorder %s480_s13, 1  ;;  %s442_s6 = smov 32   ;;  %vm181_vm0 = vcmask 261120   ;;  %v183_v1 = vld [vmem:[%s147_s29] sm:$0xff]  ;;  %vm185_vm1 = vcmask 523264  }
  0x38   : > { %s293_s7 = sshll.u32 %s480_s13, 7  ;;  %s171_s20 = scalar_lea.vmem [#allocation5], %s289_s26 }
  0x39   : > { %s173_s28 = scalar_select %p172_p11, %s480_s13, 1 }
  0x3a   : > { %s201_s8 = sshll.u32 %s171_s20, 4  ;;  %s581_s17 = scalar_lea.hbm %s627_s2, %s293_s7  ;;  %s583_s8 = int_to_ptr.vmem [resolvable:$true] %s201_s8 }
  0x3b   : > { %s291_s30 = sshll.u32 %s173_s28, 3  ;;  %s188_s19 = scalar_lea.sflag [#allocation4], %s564_s25 }
  0x3c   : > { %s175_s5 = scalar_lea.vmem %s626_s1, %s291_s30  ;;  %s373_s23 = scalar_lea.vmem %s583_s8, 128 }
  0x3d   : > { %v176_v0 = vld [vmem:[%s175_s5] sm:$0xff]  ;;  %p374_p6 = scmp.ne.s32.totalorder %s583_s8, %s373_s23  ;;  %p636_p12 = scmp.ne.s32.totalorder %s631_s21, 0 }
  0x3e   : > { %178 = vrot.lane.b32.xlu0 %v176_v0, %s442_s6  ;;  %s443_s13 = smov [#allocation5]  }
  0x3f   : > { %p375_p13 = pnand %p374_p6, %p636_p12  ;;  %s377_s24 = sshll.u32 %s443_s13, 4  ;;  %s378_s24 = int_to_ptr.vmem [resolvable:$false] %s377_s24 }
  0x40   : > { %s379_s26 = scalar_lea.vmem %s378_s24, 256  ;;  %p380_p10 = scmp.lt.s32.totalorder %s583_s8, %s378_s24 }
  0x41   : > { %p376_p7 = pneg %p375_p13  ;;  %p381_p2 = scmp.lt.s32.totalorder %s379_s26, %s373_s23 }
  0x43   : > { %p382_p4 = por %p381_p2, %p380_p10 }
  0x45   : > { %p383_p5 = pnand %p382_p4, %p376_p7 }
  0xb0   : > { %v179_v2 = vpop.permute.xlu0 %178 }
  0xb1   : > { %v182_v3 = vsel %vm181_vm0, %v176_v0, %v179_v2 }
  0xb2   : > { %v184_v4 = vadd.f32 %v183_v1, %v182_v3 }
  0xb4   : > { %186 = vst.msk [vmem:[%s171_s20] sm:$0xff] %vm185_vm1, %v184_v4 }
  0xb5   : > { %386 = shalt.err (!%p383_p5)
}
  0xb6   : > { %s387_s25 = scalar_lea.hbm %s581_s17, 128  ;;  %s391_s28 = scalar_lea.hbm %s627_s2, 256 }
  0xb7   : > { %p388_p8 = scmp.ne.s32.totalorder %s581_s17, %s387_s25  ;;  %p392_p1 = scmp.lt.u32.totalorder %s581_s17, %s627_s2 }
  0xb8   : > { %p393_p3 = scmp.lt.u32.totalorder %s391_s28, %s387_s25  ;;  %p395_p6 = scmp.lt.u32.totalorder %s387_s25, %s581_s17 }
  0xb9   : > { %p389_p9 = pnand %p388_p8, %p636_p12 }
  0xba   : > { %p394_p11 = por %p393_p3, %p392_p1 }
  0xbb   : > { %p390_p0 = pneg %p389_p9 }
  0xbc   : > { %p396_p13 = por %p395_p6, %p394_p11 }
  0xbe   : > { %p397_p7 = pnand %p396_p13, %p390_p0 }
  0xc0   : > { %400 = shalt.err (!%p397_p7)
}
  0xc1   : > { %298 = dma.vmem_to_hbm [thread:$0]  (%p636_p12), %s583_s8, 128, %s581_s17, %s188_s19  }
  0xc2 PF: > { %s213_s4 = sand.u32 1, %s427_s9   ;;  %p637_p10 = scmp.ne.s32.totalorder %s632_s22, 0 }
  0xc3   : > { %p638_p2 = scmp.ge.s32.totalorder %s439_s12, 2  ;;  %s214_s5 = scalar_lea.sflag [#allocation4], %s213_s4 }
  0xc5   : > { %p305_p4 = pnand %p638_p2, %p637_p10 }
  0xc7   : > { %422 = dma.done.wait (!%p305_p4), %s214_s5, 128  }
  0xc8   : > { %424 = vsyncadd (!%p305_p4), %s214_s5, 4294967168  ;;  %p15_p5 = scmp.ge.s32.totalorder %s484_s15, 4   ;;  %s639_s9 = smov %s431_s10 }
  0xc9   : > { %s640_s10 = smov %s435_s11  ;;  %s641_s11 = smov %s496_s18 }
  0xca   : > { %s642_s12 = smov %s484_s15  ;;  %17 = sbr.rel (!%p15_p5) target bundleno = 5 (0x5), region = 76 }
  0xd1   :  { %219 = vsyncpa [#allocation3], 1 }
  0xd2   :  { %221 = vsyncpa [#allocation3 + $0x1], 1 }
  0xd3   :  { %222 = vsyncpa [#allocation4], 1 }
  0xd4   :  { %224 = vsyncpa [#allocation4 + $0x1], 1 }

</bundles_post_ra>
